<compile_context>
chip_gen: v5e
topology: v5e:2x2
jax: 0.10.0
libtpu: 0.0.40
codegen_flags: <defaults>
</compile_context>

<pallas_src>
import math
from functools import partial

import numpy as np
import jax
import jax.numpy as jnp
from jax.experimental import pallas as pl
from jax.experimental.pallas import tpu as pltpu


def _round_up(x, m):
    return ((x + m - 1) // m) * m


# --------------------------------------------------------------------------
# Pallas kernels
# --------------------------------------------------------------------------
def _gemm_relu_kernel(x_ref, w_ref, o_ref):
    """o = relu(x @ w); bf16 MXU inputs, f32 accumulate/elementwise."""
    acc = jnp.dot(x_ref[...], w_ref[...], preferred_element_type=jnp.float32)
    o_ref[...] = jnp.maximum(acc, 0.0).astype(o_ref.dtype)


def pallas_gemm_relu(x, w, *, tm=256):
    """Tiled (over M) GEMM + fused ReLU.  x: (M, K) bf16, w: (K, N) bf16."""
    M, K = x.shape
    K2, N = w.shape
    assert K == K2
    tm = min(tm, _round_up(M, 8))
    M_pad = _round_up(M, tm)
    if M_pad != M:
        x = jnp.pad(x, ((0, M_pad - M), (0, 0)))
    grid = (M_pad // tm,)
    flops = 2 * M_pad * N * K
    bytes_accessed = int(M_pad * K * 2 + K * N * 2 + M_pad * N * 2)
    out = pl.pallas_call(
        _gemm_relu_kernel,
        out_shape=jax.ShapeDtypeStruct((M_pad, N), jnp.bfloat16),
        grid=grid,
        in_specs=[
            pl.BlockSpec((tm, K), lambda i: (i, 0)),
            pl.BlockSpec((K, N), lambda i: (0, 0)),
        ],
        out_specs=pl.BlockSpec((tm, N), lambda i: (i, 0)),
        compiler_params=pltpu.CompilerParams(
            dimension_semantics=("parallel",),
            vmem_limit_bytes=32 * 1024 * 1024,
        ),
        cost_estimate=pl.CostEstimate(
            flops=flops, transcendentals=0, bytes_accessed=bytes_accessed),
    )(x, w)
    return out[:M] if M_pad != M else out


def _mlp_head_kernel(*refs, n_layers):
    """Fused dueling head: value+adv branches packed into one MLP.

    refs = (feat, W0, b0, W1, b1, ..., out).  ReLU on all but the last layer;
    the dueling combine v + (a - mean(a)) is already folded into the last W/b.
    """
    h = refs[0][...]                                   # (tm, F) bf16
    out_ref = refs[-1]
    for i in range(n_layers):
        w = refs[1 + 2 * i][...]
        b = refs[2 + 2 * i][...]
        z = jnp.dot(h, w, preferred_element_type=jnp.float32) + b
        if i < n_layers - 1:
            h = jnp.maximum(z, 0.0).astype(jnp.bfloat16)
        else:
            out_ref[...] = z.astype(out_ref.dtype)


def pallas_dueling_head(feat, head_Ws, head_bs, out_dim, *, tm=128):
    B, F = feat.shape
    assert head_Ws[-1].shape[1] == out_dim
    tm_b = min(tm, _round_up(B, 8))
    B_pad = _round_up(B, tm_b)
    if B_pad != B:
        feat = jnp.pad(feat, ((0, B_pad - B), (0, 0)))

    n_layers = len(head_Ws)
    args = [feat]
    in_specs = [pl.BlockSpec((tm_b, F), lambda i: (i, 0))]
    for W, b in zip(head_Ws, head_bs):
        args += [W, b]
        in_specs += [pl.BlockSpec(W.shape, lambda i: (0, 0)),
                     pl.BlockSpec(b.shape, lambda i: (0, 0))]

    flops = 2 * B_pad * sum(W.shape[0] * W.shape[1] for W in head_Ws)
    bytes_accessed = int(
        B_pad * F * 2
        + sum(W.size * 2 + b.size * 4 for W, b in zip(head_Ws, head_bs))
        + B_pad * out_dim * 4)

    out = pl.pallas_call(
        partial(_mlp_head_kernel, n_layers=n_layers),
        out_shape=jax.ShapeDtypeStruct((B_pad, out_dim), jnp.float32),
        grid=(B_pad // tm_b,),
        in_specs=in_specs,
        out_specs=pl.BlockSpec((tm_b, out_dim), lambda i: (i, 0)),
        compiler_params=pltpu.CompilerParams(
            dimension_semantics=("parallel",),
            vmem_limit_bytes=32 * 1024 * 1024,
        ),
        cost_estimate=pl.CostEstimate(
            flops=flops, transcendentals=0, bytes_accessed=bytes_accessed),
    )(*args)
    return out[:B] if B_pad != B else out


# --------------------------------------------------------------------------
# Host-side glue: im2col patch extraction (NHWC) and parameter packing
# --------------------------------------------------------------------------
# TODO(synk): gather conv patches in-kernel via manual DMA/index_map so the
# k*k-duplicated im2col matrix never hits HBM (largest remaining HBM cost).
def im2col_nhwc(x, k, stride, pad):
    """x: (B, H, W, C) -> patches (B*Ho*Wo, k*k*C), feature order (kh, kw, C)."""
    B, H, W, C = x.shape
    xp = jnp.pad(x, ((0, 0), (pad, pad), (pad, pad), (0, 0)))
    Ho = (H + 2 * pad - k) // stride + 1
    Wo = (W + 2 * pad - k) // stride + 1
    cols = []
    for i in range(k):
        for j in range(k):
            cols.append(xp[:, i:i + stride * (Ho - 1) + 1:stride,
                           j:j + stride * (Wo - 1) + 1:stride, :])
    col = jnp.stack(cols, axis=3)                       # (B, Ho, Wo, k*k, C)
    return col.reshape(B * Ho * Wo, k * k * C), Ho, Wo


def pack_conv_weights(conv_weights, conv_params):
    """OIHW -> (k*k*Cin, Cout), bf16; fold the x/255 scale into conv-0."""
    w2ds = []
    for idx, (w, (c_out, k, s, p)) in enumerate(zip(conv_weights, conv_params)):
        w2d = jnp.transpose(w, (2, 3, 1, 0)).reshape(-1, c_out)  # (kh,kw,Cin) rows
        if idx == 0:
            w2d = w2d / 255.0
        w2ds.append(w2d.astype(jnp.bfloat16))
    return w2ds


def fuse_head_params(value_params, adv_params, conv_out_chw, out_dim):
    """Pack value+adv MLPs into one MLP (concat / block-diag weights).

    Also: (a) permute the first layer's rows so NHWC-flattened features match
    PyTorch's NCHW flatten, (b) fold the linear dueling combine
    v + (a - mean(a)) into the final weight/bias.
    """
    C, H, W = conv_out_chw
    perm = np.arange(C * H * W).reshape(C, H, W).transpose(1, 2, 0).reshape(-1)

    A = out_dim
    # combine matrix: [v, a1..aA] @ Cmat = v + a - mean(a)
    Cmat = jnp.asarray(
        np.concatenate([np.ones((1, A), np.float32),
                        np.eye(A, dtype=np.float32) - 1.0 / A], axis=0))

    n = len(value_params)
    Ws, bs = [], []
    for i in range(n):
        wv, bv = value_params[i]
        wa, ba = adv_params[i]
        if i == 0:
            W = jnp.concatenate([wv[perm], wa[perm]], axis=1)
        else:
            top = jnp.concatenate(
                [wv, jnp.zeros((wv.shape[0], wa.shape[1]), jnp.float32)], axis=1)
            bot = jnp.concatenate(
                [jnp.zeros((wa.shape[0], wv.shape[1]), jnp.float32), wa], axis=1)
            W = jnp.concatenate([top, bot], axis=0)
        b = jnp.concatenate([bv, ba])
        if i == n - 1:                       # fold dueling combine into last layer
            W = W @ Cmat
            b = b @ Cmat
        Ws.append(W.astype(jnp.bfloat16))
        bs.append(b.reshape(1, -1).astype(jnp.float32))
    return Ws, bs


# --------------------------------------------------------------------------
# DuelingNet forward (Pallas kernels for all hot-path compute)
# --------------------------------------------------------------------------
def dueling_net_forward(x, conv_w2ds, conv_meta, head_Ws, head_bs, out_dim):
    B = x.shape[0]
    cur = jnp.transpose(x, (0, 2, 3, 1)).astype(jnp.bfloat16)   # NHWC, bf16 once
    for w2d, (c_out, k, s, p) in zip(conv_w2ds, conv_meta):
        col, ho, wo = im2col_nhwc(cur, k, s, p)
        out = pallas_gemm_relu(col, w2d)                 # (B*Ho*Wo, Cout), ReLU fused
        cur = out.reshape(B, ho, wo, c_out)              # stays NHWC — no transpose
    feat = cur.reshape(B, -1)                            # NHWC flatten (weights permuted)
    return pallas_dueling_head(feat, head_Ws, head_bs, out_dim)


# --------------------------------------------------------------------------
# Pure-JAX f32 reference (for correctness check)
# --------------------------------------------------------------------------
def reference_forward(x, conv_weights, conv_params, value_params, adv_params):
    h = x / 255.0
    for w, (c_out, k, s, p) in zip(conv_weights, conv_params):
        h = jax.lax.conv_general_dilated(
            h, w, window_strides=(s, s), padding=[(p, p), (p, p)],
            dimension_numbers=("NCHW", "OIHW", "NCHW"))
        h = jnp.maximum(h, 0.0)
    f = h.reshape(h.shape[0], -1)

    def branch(params):
        z = f
        for i, (w, b) in enumerate(params):
            z = z @ w + b
            if i < len(params) - 1:
                z = jnp.maximum(z, 0.0)
        return z

    v = branch(value_params)
    a = branch(adv_params)
    return v + (a - jnp.mean(a, axis=1, keepdims=True))


# --------------------------------------------------------------------------
# Deterministic parameter init (kaiming-normal weights, zero biases)
# --------------------------------------------------------------------------
def kaiming_normal(key, shape, fan_in):
    std = math.sqrt(2.0 / fan_in)
    return std * jax.random.normal(key, shape, dtype=jnp.float32)


def build_params(key, input_dim, output_dim, conv_params, linear_sizes):
    c_in, h_in, w_in = input_dim
    conv_weights = []
    for (c_out, k, s, p) in conv_params:
        key, sub = jax.random.split(key)
        conv_weights.append(kaiming_normal(sub, (c_out, c_in, k, k), c_in * k * k))
        h_in = math.floor((h_in + 2 * p - (k - 1) - 1) / s + 1)
        w_in = math.floor((w_in + 2 * p - (k - 1) - 1) / s + 1)
        c_in = c_out
    flat_dim = c_in * h_in * w_in

    def build_mlp(key, d_final):
        params = []
        d = flat_dim
        for d_out in linear_sizes + [d_final]:
            key, kw = jax.random.split(key)
            w = kaiming_normal(kw, (d, d_out), d)        # stored as (in, out)
            b = jnp.zeros((d_out,), dtype=jnp.float32)
            params.append((w, b))
            d = d_out
        return key, params

    key, value_params = build_mlp(key, 1)
    key, adv_params = build_mlp(key, output_dim)
    return conv_weights, value_params, adv_params, (c_in, h_in, w_in)


# --------------------------------------------------------------------------
if __name__ == "__main__":
    key = jax.random.PRNGKey(0)

    # small, module-consistent shapes
    B = 2
    input_dim = (4, 16, 16)                        # (C, H, W)
    output_dim = 6
    conv_params = [(8, 3, 1, 1), (16, 3, 2, 1)]    # (c_out, k, stride, pad)
    linear_sizes = [32]

    key, kparams, kx = jax.random.split(key, 3)
    conv_weights, value_params, adv_params, conv_out_chw = build_params(
        kparams, input_dim, output_dim, conv_params, linear_sizes)

    x = jax.random.uniform(kx, (B,) + input_dim, dtype=jnp.float32,
                           minval=0.0, maxval=255.0)

    # host-side packing (scale fold, NHWC reorder, branch fusion, bf16 cast)
    conv_w2ds = pack_conv_weights(conv_weights, conv_params)
    head_Ws, head_bs = fuse_head_params(value_params, adv_params,
                                        conv_out_chw, output_dim)

    @jax.jit
    def fwd(inp):
        return dueling_net_forward(inp, conv_w2ds, conv_params,
                                   head_Ws, head_bs, output_dim)

    out = jax.block_until_ready(fwd(x))

    ref = reference_forward(x, conv_weights, conv_params,
                            value_params, adv_params)

    assert out.shape == (B, output_dim)
    assert bool(jnp.all(jnp.isfinite(out)))
    # bf16 MXU inputs (f32 accumulate) -> loose-but-meaningful tolerance vs f32 ref
    np.testing.assert_allclose(np.asarray(out), np.asarray(ref),
                               rtol=5e-2, atol=5e-2)
    print("KERNEL_OK")
</pallas_src>

<mosaic_0001>
module attributes {stable_mosaic.version = 11 : i64} {
  func.func @_gemm_relu_kernel(%arg0: i32, %arg1: memref<256x36xbf16, #tpu.memory_space<vmem>>, %arg2: memref<36x8xbf16, #tpu.memory_space<vmem>>, %arg3: memref<256x8xbf16, #tpu.memory_space<vmem>>) attributes {dimension_semantics = [#tpu.dimension_semantics<parallel>], iteration_bounds = array<i64: 2>, scalar_prefetch = 0 : i64, scratch_operands = 0 : i64, tpu.core_type = #tpu.core_type<tc>, window_params = [{transform_indices = @transform_0, window_bounds = array<i64: 256, 36>}, {pipeline_mode = #tpu.pipeline_mode<synchronous>, transform_indices = @transform_1, window_bounds = array<i64: 36, 8>}, {transform_indices = @transform_2, window_bounds = array<i64: 256, 8>}]} {
    %c0 = arith.constant 0 : index
    %c0_0 = arith.constant 0 : index
    %0 = vector.load %arg1[%c0, %c0_0] : memref<256x36xbf16, #tpu.memory_space<vmem>>, vector<256x36xbf16>
    %c0_1 = arith.constant 0 : index
    %c0_2 = arith.constant 0 : index
    %1 = vector.load %arg2[%c0_1, %c0_2] : memref<36x8xbf16, #tpu.memory_space<vmem>>, vector<36x8xbf16>
    %cst = arith.constant dense<0.000000e+00> : vector<256x8xf32>
    %2 = tpu.matmul %0, %1, %cst {dimension_numbers = #tpu.dot_dimension_numbers<[1], [0], [0], [1], [0, 0, 1, 1], [], []>} : vector<256x36xbf16>, vector<36x8xbf16>, vector<256x8xf32> -> vector<256x8xf32>
    %cst_3 = arith.constant 0.000000e+00 : f32
    %3 = vector.broadcast %cst_3 : f32 to vector<256x8xf32>
    %4 = arith.maximumf %2, %3 : vector<256x8xf32>
    %5 = arith.truncf %4 : vector<256x8xf32> to vector<256x8xbf16>
    %c0_4 = arith.constant 0 : index
    %c0_5 = arith.constant 0 : index
    %6 = vector.load %arg3[%c0_4, %c0_5] : memref<256x8xbf16, #tpu.memory_space<vmem>>, vector<256x8xbf16>
    tpu.vector_store %arg3[%c0_4, %c0_5], %5 {strides = array<i32>} : memref<256x8xbf16, #tpu.memory_space<vmem>>, vector<256x8xbf16>,
    return
  }
  func.func @transform_0(%arg0: i32) -> (i32, i32) {
    %c0_i32 = arith.constant 0 : i32
    %c0_i32_0 = arith.constant 0 : i32
    return %arg0, %c0_i32 : i32, i32
  }
  func.func @transform_1(%arg0: i32) -> (i32, i32) {
    %c0_i32 = arith.constant 0 : i32
    %c0_i32_0 = arith.constant 0 : i32
    %c0_i32_1 = arith.constant 0 : i32
    return %c0_i32, %c0_i32_0 : i32, i32
  }
  func.func @transform_2(%arg0: i32) -> (i32, i32) {
    %c0_i32 = arith.constant 0 : i32
    %c0_i32_0 = arith.constant 0 : i32
    return %arg0, %c0_i32 : i32, i32
  }
}

module attributes {stable_mosaic.version = 11 : i64} {
  func.func @_gemm_relu_kernel(%arg0: i32, %arg1: memref<128x72xbf16, #tpu.memory_space<vmem>>, %arg2: memref<72x16xbf16, #tpu.memory_space<vmem>>, %arg3: memref<128x16xbf16, #tpu.memory_space<vmem>>) attributes {dimension_semantics = [#tpu.dimension_semantics<parallel>], iteration_bounds = array<i64: 1>, scalar_prefetch = 0 : i64, scratch_operands = 0 : i64, tpu.core_type = #tpu.core_type<tc>, window_params = [{transform_indices = @transform_0, window_bounds = array<i64: 128, 72>}, {pipeline_mode = #tpu.pipeline_mode<synchronous>, transform_indices = @transform_1, window_bounds = array<i64: 72, 16>}, {transform_indices = @transform_2, window_bounds = array<i64: 128, 16>}]} {
    %c0 = arith.constant 0 : index
    %c0_0 = arith.constant 0 : index
    %0 = vector.load %arg1[%c0, %c0_0] : memref<128x72xbf16, #tpu.memory_space<vmem>>, vector<128x72xbf16>
    %c0_1 = arith.constant 0 : index
    %c0_2 = arith.constant 0 : index
    %1 = vector.load %arg2[%c0_1, %c0_2] : memref<72x16xbf16, #tpu.memory_space<vmem>>, vector<72x16xbf16>
    %cst = arith.constant dense<0.000000e+00> : vector<128x16xf32>
    %2 = tpu.matmul %0, %1, %cst {dimension_numbers = #tpu.dot_dimension_numbers<[1], [0], [0], [1], [0, 0, 1, 1], [], []>} : vector<128x72xbf16>, vector<72x16xbf16>, vector<128x16xf32> -> vector<128x16xf32>
    %cst_3 = arith.constant 0.000000e+00 : f32
    %3 = vector.broadcast %cst_3 : f32 to vector<128x16xf32>
    %4 = arith.maximumf %2, %3 : vector<128x16xf32>
    %5 = arith.truncf %4 : vector<128x16xf32> to vector<128x16xbf16>
    %c0_4 = arith.constant 0 : index
    %c0_5 = arith.constant 0 : index
    %6 = vector.load %arg3[%c0_4, %c0_5] : memref<128x16xbf16, #tpu.memory_space<vmem>>, vector<128x16xbf16>
    tpu.vector_store %arg3[%c0_4, %c0_5], %5 {strides = array<i32>} : memref<128x16xbf16, #tpu.memory_space<vmem>>, vector<128x16xbf16>,
    return
  }
  func.func @transform_0(%arg0: i32) -> (i32, i32) {
    %c0_i32 = arith.constant 0 : i32
    %c0_i32_0 = arith.constant 0 : i32
    return %arg0, %c0_i32 : i32, i32
  }
  func.func @transform_1(%arg0: i32) -> (i32, i32) {
    %c0_i32 = arith.constant 0 : i32
    %c0_i32_0 = arith.constant 0 : i32
    %c0_i32_1 = arith.constant 0 : i32
    return %c0_i32, %c0_i32_0 : i32, i32
  }
  func.func @transform_2(%arg0: i32) -> (i32, i32) {
    %c0_i32 = arith.constant 0 : i32
    %c0_i32_0 = arith.constant 0 : i32
    return %arg0, %c0_i32 : i32, i32
  }
}

module attributes {stable_mosaic.version = 11 : i64} {
  func.func @_mlp_head_kernel(%arg0: i32, %arg1: memref<8x1024xbf16, #tpu.memory_space<vmem>>, %arg2: memref<1024x64xbf16, #tpu.memory_space<vmem>>, %arg3: memref<1x64xf32, #tpu.memory_space<vmem>>, %arg4: memref<64x6xbf16, #tpu.memory_space<vmem>>, %arg5: memref<1x6xf32, #tpu.memory_space<vmem>>, %arg6: memref<8x6xf32, #tpu.memory_space<vmem>>) attributes {dimension_semantics = [#tpu.dimension_semantics<parallel>], iteration_bounds = array<i64: 1>, scalar_prefetch = 0 : i64, scratch_operands = 0 : i64, tpu.core_type = #tpu.core_type<tc>, window_params = [{transform_indices = @transform_0, window_bounds = array<i64: 8, 1024>}, {pipeline_mode = #tpu.pipeline_mode<synchronous>, transform_indices = @transform_1, window_bounds = array<i64: 1024, 64>}, {pipeline_mode = #tpu.pipeline_mode<synchronous>, transform_indices = @transform_2, window_bounds = array<i64: 1, 64>}, {pipeline_mode = #tpu.pipeline_mode<synchronous>, transform_indices = @transform_3, window_bounds = array<i64: 64, 6>}, {pipeline_mode = #tpu.pipeline_mode<synchronous>, transform_indices = @transform_4, window_bounds = array<i64: 1, 6>}, {transform_indices = @transform_5, window_bounds = array<i64: 8, 6>}]} {
    %c0 = arith.constant 0 : index
    %c0_0 = arith.constant 0 : index
    %0 = vector.load %arg1[%c0, %c0_0] : memref<8x1024xbf16, #tpu.memory_space<vmem>>, vector<8x1024xbf16>
    %c0_1 = arith.constant 0 : index
    %c0_2 = arith.constant 0 : index
    %1 = vector.load %arg2[%c0_1, %c0_2] : memref<1024x64xbf16, #tpu.memory_space<vmem>>, vector<1024x64xbf16>
    %c0_3 = arith.constant 0 : index
    %c0_4 = arith.constant 0 : index
    %2 = vector.load %arg3[%c0_3, %c0_4] : memref<1x64xf32, #tpu.memory_space<vmem>>, vector<1x64xf32>
    %cst = arith.constant dense<0.000000e+00> : vector<8x64xf32>
    %3 = tpu.matmul %0, %1, %cst {dimension_numbers = #tpu.dot_dimension_numbers<[1], [0], [0], [1], [0, 0, 1, 1], [], []>} : vector<8x1024xbf16>, vector<1024x64xbf16>, vector<8x64xf32> -> vector<8x64xf32>
    %4 = vector.broadcast %2 : vector<1x64xf32> to vector<8x64xf32>
    %5 = arith.addf %3, %4 : vector<8x64xf32>
    %cst_5 = arith.constant 0.000000e+00 : f32
    %6 = vector.broadcast %cst_5 : f32 to vector<8x64xf32>
    %7 = arith.maximumf %5, %6 : vector<8x64xf32>
    %8 = arith.truncf %7 : vector<8x64xf32> to vector<8x64xbf16>
    %c0_6 = arith.constant 0 : index
    %c0_7 = arith.constant 0 : index
    %9 = vector.load %arg4[%c0_6, %c0_7] : memref<64x6xbf16, #tpu.memory_space<vmem>>, vector<64x6xbf16>
    %c0_8 = arith.constant 0 : index
    %c0_9 = arith.constant 0 : index
    %10 = vector.load %arg5[%c0_8, %c0_9] : memref<1x6xf32, #tpu.memory_space<vmem>>, vector<1x6xf32>
    %cst_10 = arith.constant dense<0.000000e+00> : vector<8x6xf32>
    %11 = tpu.matmul %8, %9, %cst_10 {dimension_numbers = #tpu.dot_dimension_numbers<[1], [0], [0], [1], [0, 0, 1, 1], [], []>} : vector<8x64xbf16>, vector<64x6xbf16>, vector<8x6xf32> -> vector<8x6xf32>
    %12 = vector.broadcast %10 : vector<1x6xf32> to vector<8x6xf32>
    %13 = arith.addf %11, %12 : vector<8x6xf32>
    %c0_11 = arith.constant 0 : index
    %c0_12 = arith.constant 0 : index
    %14 = vector.load %arg6[%c0_11, %c0_12] : memref<8x6xf32, #tpu.memory_space<vmem>>, vector<8x6xf32>
    tpu.vector_store %arg6[%c0_11, %c0_12], %13 {strides = array<i32>} : memref<8x6xf32, #tpu.memory_space<vmem>>, vector<8x6xf32>,
    return
  }
  func.func @transform_0(%arg0: i32) -> (i32, i32) {
    %c0_i32 = arith.constant 0 : i32
    %c0_i32_0 = arith.constant 0 : i32
    return %arg0, %c0_i32 : i32, i32
  }
  func.func @transform_1(%arg0: i32) -> (i32, i32) {
    %c0_i32 = arith.constant 0 : i32
    %c0_i32_0 = arith.constant 0 : i32
    %c0_i32_1 = arith.constant 0 : i32
    return %c0_i32, %c0_i32_0 : i32, i32
  }
  func.func @transform_2(%arg0: i32) -> (i32, i32) {
    %c0_i32 = arith.constant 0 : i32
    %c0_i32_0 = arith.constant 0 : i32
    %c0_i32_1 = arith.constant 0 : i32
    return %c0_i32, %c0_i32_0 : i32, i32
  }
  func.func @transform_3(%arg0: i32) -> (i32, i32) {
    %c0_i32 = arith.constant 0 : i32
    %c0_i32_0 = arith.constant 0 : i32
    %c0_i32_1 = arith.constant 0 : i32
    return %c0_i32, %c0_i32_0 : i32, i32
  }
  func.func @transform_4(%arg0: i32) -> (i32, i32) {
    %c0_i32 = arith.constant 0 : i32
    %c0_i32_0 = arith.constant 0 : i32
    %c0_i32_1 = arith.constant 0 : i32
    return %c0_i32, %c0_i32_0 : i32, i32
  }
  func.func @transform_5(%arg0: i32) -> (i32, i32) {
    %c0_i32 = arith.constant 0 : i32
    %c0_i32_0 = arith.constant 0 : i32
    return %arg0, %c0_i32 : i32, i32
  }
}

</mosaic_0001>

<bundles_post_ra>
// kernel: fwd.3
= control target key start
LH: loop header
LB: loop body
LE: loop exit
PB: predicated region body
PF: predicated region fallthrough
CT: control target
= control target key end

     0   :  { %s732_s9 = smov 0   ;;  %s865_s0 = inlined_call_operand.vmem [shape: bf16[512,36], index: 0, kind: input, shape index: {}]   ;;  %s866_s1 = inlined_call_operand.vmem [shape: bf16[36,8], index: 1, kind: input, shape index: {}]   ;;  %s867_s2 = inlined_call_operand.vmem [shape: bf16[512,8], index: 2, kind: output, shape index: {}]  }
   0x1 LB: > { %s575_s10 = sadd.s32 4294967295, %s715_s9   ;;  %p579_p0 = scmp.ge.s32.totalorder %s715_s9, 1  ;;  %s715_s9 = sphi %s732_s9, %s12_s9  }
   0x2   : > { %p113_p1 = scmp.lt.s32.totalorder %s715_s9, 3 }
   0x4   : > { %p114_p2 = pnand %p579_p0, %p113_p1 }
   0x5   : > { %s580_s13 = sshll.u32 (!%p114_p2), %s575_s10, 5 }
   0x6   : > { %117 = sbr.rel (%p114_p2) target bundleno = 223 (0xdf), region = 28  ;;  %p136_p3 = scmp.lt.s32.totalorder (!%p114_p2), %s580_s13, 63 }
   0xb   : > { %v184_v0 = vld [vmem:[%s866_s1 + $0x10] sm:$0x3]  ;;  %vm329_vm0 = vcmask 1041408   ;;  %s869_s13 = smov (!%p136_p3, %s580_s13), 63  ;;  %v691_v4 = vld [vmem:[%s866_s1 + $0x8] sm:$0xff]  ;;  %v690_v5 = vld [vmem:[%s866_s1] sm:$0xff] }
   0xc   : > { %v274_v1 = vunpack.c.l.b16 %v184_v0  ;;  %s581_s16 = sshll.u32 %s869_s13, 2  ;;  %vm280_vm1 = vcmask 293888   ;;  %vm486_vm2 = vcmask 60416  }
   0xd   : > { %s757_s21 = scalar_lea.vmem %s865_s0, %s581_s16  ;;  %s796_s24 = scalar_lea.vmem %s867_s2, %s581_s16 }
   0xe   : > { %v277_v2 = vpack.c.b16 %v274_v1, %v274_v1  ;;  %v674_v6 = vld [vmem:[%s757_s21] sm:$0xff]  ;;  %v675_v10 = vld [vmem:[%s757_s21 + $0x8] sm:$0xff]  ;;  %v676_v14 = vld [vmem:[%s757_s21 + $0x10] sm:$0xff] }
   0xf   : > { %v678_v7 = vld [vmem:[%s757_s21 + $0x20] sm:$0xff]  ;;  %v679_v11 = vld [vmem:[%s757_s21 + $0x28] sm:$0xff]  ;;  %v680_v15 = vld [vmem:[%s757_s21 + $0x30] sm:$0xff] }
  0x10   : > { %v331_v3 = vsel %vm329_vm0, %v277_v2, 0  ;;  %v682_v8 = vld [vmem:[%s757_s21 + $0x40] sm:$0xff]  ;;  %v683_v12 = vld [vmem:[%s757_s21 + $0x48] sm:$0xff]  ;;  %v684_v16 = vld [vmem:[%s757_s21 + $0x50] sm:$0xff] }
  0x11   : > { %338 = vmatpush.bf16.msra.mxu0 %v331_v3  ;;  %692 = vmatpush.bf16.msra.mxu1 %v331_v3  ;;  %v686_v9 = vld [vmem:[%s757_s21 + $0x60] sm:$0xff]  ;;  %v687_v13 = vld [vmem:[%s757_s21 + $0x68] sm:$0xff]  ;;  %v688_v17 = vld [vmem:[%s757_s21 + $0x70] sm:$0xff] }
  0x12   : > { %693 = vmatpush.bf16.msra.mxu2 %v331_v3  ;;  %694 = vmatpush.bf16.msra.mxu3 %v331_v3  ;;  %v677_v18 = vld [vmem:[%s757_s21 + $0x18] sm:$0xff] }
  0x13   : > { %v681_v19 = vld [vmem:[%s757_s21 + $0x38] sm:$0xff] }
  0x14   : > { %v685_v20 = vld [vmem:[%s757_s21 + $0x58] sm:$0xff] }
  0x15   : > { %339 = vmatpush.bf16.msra.mxu0 %v691_v4  ;;  %695 = vmatpush.bf16.msra.mxu1 %v691_v4  ;;  %v689_v21 = vld [vmem:[%s757_s21 + $0x78] sm:$0xff] }
  0x16   : > { %696 = vmatpush.bf16.msra.mxu2 %v691_v4  ;;  %697 = vmatpush.bf16.msra.mxu3 %v691_v4 }
  0x19   : > { %340 = vmatpush.bf16.msra.mxu0 %v690_v5  ;;  %698 = vmatpush.bf16.msra.mxu1 %v690_v5 }
  0x1a   : > { %699 = vmatpush.bf16.msra.mxu2 %v690_v5  ;;  %700 = vmatpush.bf16.msra.mxu3 %v690_v5 }
  0x1c   : > { %656 = vmatmul.msk.bf16.vlgmr.msra.gmra.mxu0 %vm280_vm1, %v674_v6  ;;  %660 = vmatmul.msk.bf16.vlgmr.msra.gmra.mxu1 %vm280_vm1, %v678_v7 }
  0x1d   : > { %664 = vmatmul.msk.bf16.vlgmr.msra.gmra.mxu2 %vm280_vm1, %v682_v8  ;;  %668 = vmatmul.msk.bf16.vlgmr.msra.gmra.mxu3 %vm280_vm1, %v686_v9 }
  0x2c   : > { %657 = vmatmul.msk.bf16.gmra.mxu0 %vm280_vm1, %v675_v10  ;;  %661 = vmatmul.msk.bf16.gmra.mxu1 %vm280_vm1, %v679_v11 }
  0x2d   : > { %665 = vmatmul.msk.bf16.gmra.mxu2 %vm280_vm1, %v683_v12  ;;  %669 = vmatmul.msk.bf16.gmra.mxu3 %vm280_vm1, %v687_v13 }
  0x3c   : > { %658 = vmatmul.msk.bf16.gmra.mxu0 %vm280_vm1, %v676_v14  ;;  %662 = vmatmul.msk.bf16.gmra.mxu1 %vm280_vm1, %v680_v15 }
  0x3d   : > { %666 = vmatmul.msk.bf16.gmra.mxu2 %vm280_vm1, %v684_v16  ;;  %670 = vmatmul.msk.bf16.gmra.mxu3 %vm280_vm1, %v688_v17 }
  0x4c   : > { %659 = vmatmul.msk.bf16.gmra.mxu0 %vm280_vm1, %v677_v18  ;;  %663 = vmatmul.msk.bf16.gmra.mxu1 %vm280_vm1, %v681_v19 }
  0x4d   : > { %667 = vmatmul.msk.bf16.gmra.mxu2 %vm280_vm1, %v685_v20  ;;  %671 = vmatmul.msk.bf16.gmra.mxu3 %vm280_vm1, %v689_v21 }
  0x99   : > { %v342_v22 = vpop.f32.mrf.mxu0  ;;  %v362_v23 = vpop.f32.mrf.mxu1 }
  0x9a   : > { %v422_v24 = vmax.f32 %v342_v22, 0.0  ;;  %v430_v25 = vmax.f32 %v362_v23, 0.0 }
  0x9c   : > { %v454_v26 = vpack.c.bf16 %v422_v24, %v422_v24  ;;  %v462_v27 = vpack.c.bf16 %v430_v25, %v430_v25 }
  0x9e   : > { %487 = vst.msk [vmem:[%s796_s24] sm:$0xf] %vm486_vm2, %v454_v26 }
  0x9f   : > { %495 = vst.msk [vmem:[%s796_s24 + $0x20] sm:$0xf] %vm486_vm2, %v462_v27 }
  0xa0   : > { %v382_v28 = vpop.f32.mrf.mxu2  ;;  %v402_v29 = vpop.f32.mrf.mxu3 }
  0xa1   : > { %v438_v30 = vmax.f32 %v382_v28, 0.0  ;;  %v446_v31 = vmax.f32 %v402_v29, 0.0  ;;  %v344_v32 = vpop.f32.mrf.mxu0  ;;  %v364_v33 = vpop.f32.mrf.mxu1 }
  0xa2   : > { %v423_v34 = vmax.f32 %v344_v32, 0.0  ;;  %v431_v35 = vmax.f32 %v364_v33, 0.0 }
  0xa3   : > { %v470_v36 = vpack.c.bf16 %v438_v30, %v438_v30  ;;  %v478_v37 = vpack.c.bf16 %v446_v31, %v446_v31 }
  0xa4   : > { %v455_v38 = vpack.c.bf16 %v423_v34, %v423_v34  ;;  %v463_v39 = vpack.c.bf16 %v431_v35, %v431_v35 }
  0xa5   : > { %503 = vst.msk [vmem:[%s796_s24 + $0x40] sm:$0xf] %vm486_vm2, %v470_v36 }
  0xa6   : > { %511 = vst.msk [vmem:[%s796_s24 + $0x60] sm:$0xf] %vm486_vm2, %v478_v37 }
  0xa7   : > { %488 = vst.msk [vmem:[%s796_s24 + $0x4] sm:$0xf] %vm486_vm2, %v455_v38 }
  0xa8   : > { %496 = vst.msk [vmem:[%s796_s24 + $0x24] sm:$0xf] %vm486_vm2, %v463_v39  ;;  %v384_v40 = vpop.f32.mrf.mxu2  ;;  %v404_v41 = vpop.f32.mrf.mxu3 }
  0xa9   : > { %v439_v42 = vmax.f32 %v384_v40, 0.0  ;;  %v447_v43 = vmax.f32 %v404_v41, 0.0  ;;  %v347_v44 = vpop.f32.mrf.mxu0  ;;  %v367_v45 = vpop.f32.mrf.mxu1 }
  0xaa   : > { %v424_v46 = vmax.f32 %v347_v44, 0.0  ;;  %v432_v47 = vmax.f32 %v367_v45, 0.0 }
  0xab   : > { %v471_v48 = vpack.c.bf16 %v439_v42, %v439_v42  ;;  %v479_v49 = vpack.c.bf16 %v447_v43, %v447_v43 }
  0xac   : > { %v456_v50 = vpack.c.bf16 %v424_v46, %v424_v46  ;;  %v464_v51 = vpack.c.bf16 %v432_v47, %v432_v47 }
  0xad   : > { %504 = vst.msk [vmem:[%s796_s24 + $0x44] sm:$0xf] %vm486_vm2, %v471_v48 }
  0xae   : > { %512 = vst.msk [vmem:[%s796_s24 + $0x64] sm:$0xf] %vm486_vm2, %v479_v49 }
  0xaf   : > { %489 = vst.msk [vmem:[%s796_s24 + $0x8] sm:$0xf] %vm486_vm2, %v456_v50 }
  0xb0   : > { %497 = vst.msk [vmem:[%s796_s24 + $0x28] sm:$0xf] %vm486_vm2, %v464_v51  ;;  %v387_v52 = vpop.f32.mrf.mxu2  ;;  %v407_v53 = vpop.f32.mrf.mxu3 }
  0xb1   : > { %v440_v54 = vmax.f32 %v387_v52, 0.0  ;;  %v448_v55 = vmax.f32 %v407_v53, 0.0  ;;  %v349_v56 = vpop.f32.mrf.mxu0  ;;  %v369_v57 = vpop.f32.mrf.mxu1 }
  0xb2   : > { %v425_v58 = vmax.f32 %v349_v56, 0.0  ;;  %v433_v59 = vmax.f32 %v369_v57, 0.0 }
  0xb3   : > { %v472_v60 = vpack.c.bf16 %v440_v54, %v440_v54  ;;  %v480_v61 = vpack.c.bf16 %v448_v55, %v448_v55 }
  0xb4   : > { %v457_v62 = vpack.c.bf16 %v425_v58, %v425_v58  ;;  %v465_v63 = vpack.c.bf16 %v433_v59, %v433_v59 }
  0xb5   : > { %505 = vst.msk [vmem:[%s796_s24 + $0x48] sm:$0xf] %vm486_vm2, %v472_v60 }
  0xb6   : > { %513 = vst.msk [vmem:[%s796_s24 + $0x68] sm:$0xf] %vm486_vm2, %v480_v61 }
  0xb7   : > { %490 = vst.msk [vmem:[%s796_s24 + $0xc] sm:$0xf] %vm486_vm2, %v457_v62 }
  0xb8   : > { %498 = vst.msk [vmem:[%s796_s24 + $0x2c] sm:$0xf] %vm486_vm2, %v465_v63  ;;  %v389_v0 = vpop.f32.mrf.mxu2  ;;  %v409_v1 = vpop.f32.mrf.mxu3 }
  0xb9   : > { %v441_v2 = vmax.f32 %v389_v0, 0.0  ;;  %v449_v3 = vmax.f32 %v409_v1, 0.0  ;;  %v352_v4 = vpop.f32.mrf.mxu0  ;;  %v372_v5 = vpop.f32.mrf.mxu1 }
  0xba   : > { %v426_v6 = vmax.f32 %v352_v4, 0.0  ;;  %v434_v7 = vmax.f32 %v372_v5, 0.0 }
  0xbb   : > { %v473_v8 = vpack.c.bf16 %v441_v2, %v441_v2  ;;  %v481_v9 = vpack.c.bf16 %v449_v3, %v449_v3 }
  0xbc   : > { %v458_v10 = vpack.c.bf16 %v426_v6, %v426_v6  ;;  %v466_v11 = vpack.c.bf16 %v434_v7, %v434_v7 }
  0xbd   : > { %506 = vst.msk [vmem:[%s796_s24 + $0x4c] sm:$0xf] %vm486_vm2, %v473_v8 }
  0xbe   : > { %514 = vst.msk [vmem:[%s796_s24 + $0x6c] sm:$0xf] %vm486_vm2, %v481_v9 }
  0xbf   : > { %491 = vst.msk [vmem:[%s796_s24 + $0x10] sm:$0xf] %vm486_vm2, %v458_v10 }
  0xc0   : > { %499 = vst.msk [vmem:[%s796_s24 + $0x30] sm:$0xf] %vm486_vm2, %v466_v11  ;;  %v392_v12 = vpop.f32.mrf.mxu2  ;;  %v412_v13 = vpop.f32.mrf.mxu3 }
  0xc1   : > { %v442_v14 = vmax.f32 %v392_v12, 0.0  ;;  %v450_v15 = vmax.f32 %v412_v13, 0.0  ;;  %v354_v16 = vpop.f32.mrf.mxu0  ;;  %v374_v17 = vpop.f32.mrf.mxu1 }
  0xc2   : > { %v427_v18 = vmax.f32 %v354_v16, 0.0  ;;  %v435_v19 = vmax.f32 %v374_v17, 0.0 }
  0xc3   : > { %v474_v20 = vpack.c.bf16 %v442_v14, %v442_v14  ;;  %v482_v21 = vpack.c.bf16 %v450_v15, %v450_v15 }
  0xc4   : > { %v459_v22 = vpack.c.bf16 %v427_v18, %v427_v18  ;;  %v467_v23 = vpack.c.bf16 %v435_v19, %v435_v19 }
  0xc5   : > { %507 = vst.msk [vmem:[%s796_s24 + $0x50] sm:$0xf] %vm486_vm2, %v474_v20 }
  0xc6   : > { %515 = vst.msk [vmem:[%s796_s24 + $0x70] sm:$0xf] %vm486_vm2, %v482_v21 }
  0xc7   : > { %492 = vst.msk [vmem:[%s796_s24 + $0x14] sm:$0xf] %vm486_vm2, %v459_v22 }
  0xc8   : > { %500 = vst.msk [vmem:[%s796_s24 + $0x34] sm:$0xf] %vm486_vm2, %v467_v23  ;;  %v394_v24 = vpop.f32.mrf.mxu2  ;;  %v414_v25 = vpop.f32.mrf.mxu3 }
  0xc9   : > { %v443_v26 = vmax.f32 %v394_v24, 0.0  ;;  %v451_v27 = vmax.f32 %v414_v25, 0.0  ;;  %v357_v28 = vpop.f32.mrf.mxu0  ;;  %v377_v29 = vpop.f32.mrf.mxu1 }
  0xca   : > { %v428_v30 = vmax.f32 %v357_v28, 0.0  ;;  %v436_v31 = vmax.f32 %v377_v29, 0.0 }
  0xcb   : > { %v475_v32 = vpack.c.bf16 %v443_v26, %v443_v26  ;;  %v483_v33 = vpack.c.bf16 %v451_v27, %v451_v27 }
  0xcc   : > { %v460_v34 = vpack.c.bf16 %v428_v30, %v428_v30  ;;  %v468_v35 = vpack.c.bf16 %v436_v31, %v436_v31 }
  0xcd   : > { %508 = vst.msk [vmem:[%s796_s24 + $0x54] sm:$0xf] %vm486_vm2, %v475_v32 }
  0xce   : > { %516 = vst.msk [vmem:[%s796_s24 + $0x74] sm:$0xf] %vm486_vm2, %v483_v33 }
  0xcf   : > { %493 = vst.msk [vmem:[%s796_s24 + $0x18] sm:$0xf] %vm486_vm2, %v460_v34 }
  0xd0   : > { %501 = vst.msk [vmem:[%s796_s24 + $0x38] sm:$0xf] %vm486_vm2, %v468_v35  ;;  %v397_v36 = vpop.f32.mrf.mxu2  ;;  %v417_v37 = vpop.f32.mrf.mxu3 }
  0xd1   : > { %v444_v38 = vmax.f32 %v397_v36, 0.0  ;;  %v452_v39 = vmax.f32 %v417_v37, 0.0  ;;  %v359_v40 = vpop.f32.mrf.mxu0  ;;  %v379_v41 = vpop.f32.mrf.mxu1 }
  0xd2   : > { %v429_v42 = vmax.f32 %v359_v40, 0.0  ;;  %v437_v43 = vmax.f32 %v379_v41, 0.0 }
  0xd3   : > { %v476_v44 = vpack.c.bf16 %v444_v38, %v444_v38  ;;  %v484_v45 = vpack.c.bf16 %v452_v39, %v452_v39 }
  0xd4   : > { %v461_v46 = vpack.c.bf16 %v429_v42, %v429_v42  ;;  %v469_v47 = vpack.c.bf16 %v437_v43, %v437_v43 }
  0xd5   : > { %509 = vst.msk [vmem:[%s796_s24 + $0x58] sm:$0xf] %vm486_vm2, %v476_v44 }
  0xd6   : > { %517 = vst.msk [vmem:[%s796_s24 + $0x78] sm:$0xf] %vm486_vm2, %v484_v45 }
  0xd7   : > { %494 = vst.msk [vmem:[%s796_s24 + $0x1c] sm:$0xf] %vm486_vm2, %v461_v46 }
  0xd8   : > { %502 = vst.msk [vmem:[%s796_s24 + $0x3c] sm:$0xf] %vm486_vm2, %v469_v47  ;;  %v399_v48 = vpop.f32.mrf.mxu2  ;;  %v419_v49 = vpop.f32.mrf.mxu3 }
  0xd9   : > { %v445_v50 = vmax.f32 %v399_v48, 0.0  ;;  %v453_v51 = vmax.f32 %v419_v49, 0.0 }
  0xdb   : > { %v477_v52 = vpack.c.bf16 %v445_v50, %v445_v50  ;;  %v485_v53 = vpack.c.bf16 %v453_v51, %v453_v51 }
  0xdd   : > { %510 = vst.msk [vmem:[%s796_s24 + $0x5c] sm:$0xf] %vm486_vm2, %v477_v52 }
  0xde   : > { %518 = vst.msk [vmem:[%s796_s24 + $0x7c] sm:$0xf] %vm486_vm2, %v485_v53 }
  0xdf PF: > { %s12_s9 = sadd.s32 1, %s715_s9  }
  0xe0   : > { %p9_p4 = scmp.ge.s32.totalorder %s12_s9, 4  }
  0xe2   :  { %11 = sbr.rel (!%p9_p4) target bundleno = 1 (0x1), region = 58 }

// kernel: fwd.4
= control target key start
LH: loop header
LB: loop body
LE: loop exit
PB: predicated region body
PF: predicated region fallthrough
CT: control target
= control target key end

     0   :  { %vm129_vm0 = vcmask 1043456   ;;  %vm104_vm1 = vcmask 588800   ;;  %vm214_vm2 = vcmask 125952   ;;  %s444_s1 = inlined_call_operand.vmem [shape: bf16[72,16], index: 1, kind: input, shape index: {}]   ;;  %s445_s0 = inlined_call_operand.vmem [shape: bf16[128,72], index: 0, kind: input, shape index: {}]   ;;  %s446_s2 = inlined_call_operand.vmem [shape: bf16[128,16], index: 2, kind: output, shape index: {}]  }
   0x1   :  { %v36_v0 = vld [vmem:[%s444_s1 + $0x20] sm:$0xf]  ;;  %v302_v4 = vld [vmem:[%s444_s1 + $0x18] sm:$0xff]  ;;  %v301_v5 = vld [vmem:[%s444_s1 + $0x10] sm:$0xff] }
   0x2   :  { %v94_v1 = vunpack.c.l.b16 %v36_v0  ;;  %v300_v6 = vld [vmem:[%s444_s1 + $0x8] sm:$0xff]  ;;  %v299_v7 = vld [vmem:[%s444_s1] sm:$0xff]  ;;  %v293_v9 = vld [vmem:[%s445_s0 + $0x10] sm:$0xff] }
   0x3   :  { %v291_v8 = vld [vmem:[%s445_s0] sm:$0xff]  ;;  %v297_v11 = vld [vmem:[%s445_s0 + $0x30] sm:$0xff]  ;;  %v292_v12 = vld [vmem:[%s445_s0 + $0x8] sm:$0xff] }
   0x4   :  { %v99_v2 = vpack.c.b16 %v94_v1, %v94_v1  ;;  %v295_v10 = vld [vmem:[%s445_s0 + $0x20] sm:$0xff]  ;;  %v294_v13 = vld [vmem:[%s445_s0 + $0x18] sm:$0xff]  ;;  %v296_v14 = vld [vmem:[%s445_s0 + $0x28] sm:$0xff] }
   0x5   :  { %v298_v15 = vld [vmem:[%s445_s0 + $0x38] sm:$0xff] }
   0x6   :  { %v131_v3 = vsel %vm129_vm0, %v99_v2, 0 }
   0x7   :  { %136 = vmatpush.bf16.msra.mxu0 %v131_v3  ;;  %303 = vmatpush.bf16.msra.mxu1 %v131_v3 }
   0x8   :  { %304 = vmatpush.bf16.msra.mxu2 %v131_v3  ;;  %305 = vmatpush.bf16.msra.mxu3 %v131_v3 }
   0xb   :  { %137 = vmatpush.bf16.msra.mxu0 %v302_v4  ;;  %306 = vmatpush.bf16.msra.mxu1 %v302_v4 }
   0xc   :  { %307 = vmatpush.bf16.msra.mxu2 %v302_v4  ;;  %308 = vmatpush.bf16.msra.mxu3 %v302_v4 }
   0xf   :  { %138 = vmatpush.bf16.msra.mxu0 %v301_v5  ;;  %309 = vmatpush.bf16.msra.mxu1 %v301_v5 }
  0x10   :  { %310 = vmatpush.bf16.msra.mxu2 %v301_v5  ;;  %311 = vmatpush.bf16.msra.mxu3 %v301_v5 }
  0x13   :  { %139 = vmatpush.bf16.msra.mxu0 %v300_v6  ;;  %312 = vmatpush.bf16.msra.mxu1 %v300_v6 }
  0x14   :  { %313 = vmatpush.bf16.msra.mxu2 %v300_v6  ;;  %314 = vmatpush.bf16.msra.mxu3 %v300_v6 }
  0x17   :  { %140 = vmatpush.bf16.msra.mxu0 %v299_v7  ;;  %315 = vmatpush.bf16.msra.mxu1 %v299_v7 }
  0x18   :  { %316 = vmatpush.bf16.msra.mxu2 %v299_v7  ;;  %317 = vmatpush.bf16.msra.mxu3 %v299_v7 }
  0x1a   :  { %283 = vmatmul.msk.bf16.vlgmr.msra.gmra.mxu0 %vm104_vm1, %v291_v8  ;;  %285 = vmatmul.msk.bf16.vlgmr.msra.gmra.mxu1 %vm104_vm1, %v293_v9 }
  0x1b   :  { %287 = vmatmul.msk.bf16.vlgmr.msra.gmra.mxu2 %vm104_vm1, %v295_v10  ;;  %289 = vmatmul.msk.bf16.vlgmr.msra.gmra.mxu3 %vm104_vm1, %v297_v11 }
  0x2a   :  { %284 = vmatmul.msk.bf16.gmra.mxu0 %vm104_vm1, %v292_v12  ;;  %286 = vmatmul.msk.bf16.gmra.mxu1 %vm104_vm1, %v294_v13 }
  0x2b   :  { %288 = vmatmul.msk.bf16.gmra.mxu2 %vm104_vm1, %v296_v14  ;;  %290 = vmatmul.msk.bf16.gmra.mxu3 %vm104_vm1, %v298_v15 }
  0x97   :  { %v142_v16 = vpop.f32.mrf.mxu0  ;;  %v152_v17 = vpop.f32.mrf.mxu1 }
  0x98   :  { %v182_v18 = vmax.f32 %v142_v16, 0.0  ;;  %v186_v19 = vmax.f32 %v152_v17, 0.0 }
  0x9a   :  { %v198_v20 = vpack.c.bf16 %v182_v18, %v182_v18  ;;  %v202_v21 = vpack.c.bf16 %v186_v19, %v186_v19 }
  0x9c   :  { %215 = vst.msk [vmem:[%s446_s2] sm:$0xf] %vm214_vm2, %v198_v20 }
  0x9d   :  { %219 = vst.msk [vmem:[%s446_s2 + $0x10] sm:$0xf] %vm214_vm2, %v202_v21 }
  0x9e   :  { %v162_v22 = vpop.f32.mrf.mxu2  ;;  %v172_v23 = vpop.f32.mrf.mxu3 }
  0x9f   :  { %v190_v24 = vmax.f32 %v162_v22, 0.0  ;;  %v194_v25 = vmax.f32 %v172_v23, 0.0  ;;  %v144_v26 = vpop.f32.mrf.mxu0  ;;  %v154_v27 = vpop.f32.mrf.mxu1 }
  0xa0   :  { %v183_v28 = vmax.f32 %v144_v26, 0.0  ;;  %v187_v29 = vmax.f32 %v154_v27, 0.0 }
  0xa1   :  { %v206_v30 = vpack.c.bf16 %v190_v24, %v190_v24  ;;  %v210_v31 = vpack.c.bf16 %v194_v25, %v194_v25 }
  0xa2   :  { %v199_v32 = vpack.c.bf16 %v183_v28, %v183_v28  ;;  %v203_v33 = vpack.c.bf16 %v187_v29, %v187_v29 }
  0xa3   :  { %223 = vst.msk [vmem:[%s446_s2 + $0x20] sm:$0xf] %vm214_vm2, %v206_v30 }
  0xa4   :  { %227 = vst.msk [vmem:[%s446_s2 + $0x30] sm:$0xf] %vm214_vm2, %v210_v31 }
  0xa5   :  { %216 = vst.msk [vmem:[%s446_s2 + $0x4] sm:$0xf] %vm214_vm2, %v199_v32 }
  0xa6   :  { %220 = vst.msk [vmem:[%s446_s2 + $0x14] sm:$0xf] %vm214_vm2, %v203_v33  ;;  %v164_v34 = vpop.f32.mrf.mxu2  ;;  %v174_v35 = vpop.f32.mrf.mxu3 }
  0xa7   :  { %v191_v36 = vmax.f32 %v164_v34, 0.0  ;;  %v195_v37 = vmax.f32 %v174_v35, 0.0  ;;  %v147_v38 = vpop.f32.mrf.mxu0  ;;  %v157_v39 = vpop.f32.mrf.mxu1 }
  0xa8   :  { %v184_v40 = vmax.f32 %v147_v38, 0.0  ;;  %v188_v41 = vmax.f32 %v157_v39, 0.0 }
  0xa9   :  { %v207_v42 = vpack.c.bf16 %v191_v36, %v191_v36  ;;  %v211_v43 = vpack.c.bf16 %v195_v37, %v195_v37 }
  0xaa   :  { %v200_v44 = vpack.c.bf16 %v184_v40, %v184_v40  ;;  %v204_v45 = vpack.c.bf16 %v188_v41, %v188_v41 }
  0xab   :  { %224 = vst.msk [vmem:[%s446_s2 + $0x24] sm:$0xf] %vm214_vm2, %v207_v42 }
  0xac   :  { %228 = vst.msk [vmem:[%s446_s2 + $0x34] sm:$0xf] %vm214_vm2, %v211_v43 }
  0xad   :  { %217 = vst.msk [vmem:[%s446_s2 + $0x8] sm:$0xf] %vm214_vm2, %v200_v44 }
  0xae   :  { %221 = vst.msk [vmem:[%s446_s2 + $0x18] sm:$0xf] %vm214_vm2, %v204_v45  ;;  %v167_v46 = vpop.f32.mrf.mxu2  ;;  %v177_v47 = vpop.f32.mrf.mxu3 }
  0xaf   :  { %v192_v48 = vmax.f32 %v167_v46, 0.0  ;;  %v196_v49 = vmax.f32 %v177_v47, 0.0  ;;  %v149_v50 = vpop.f32.mrf.mxu0  ;;  %v159_v51 = vpop.f32.mrf.mxu1 }
  0xb0   :  { %v185_v52 = vmax.f32 %v149_v50, 0.0  ;;  %v189_v53 = vmax.f32 %v159_v51, 0.0 }
  0xb1   :  { %v208_v54 = vpack.c.bf16 %v192_v48, %v192_v48  ;;  %v212_v55 = vpack.c.bf16 %v196_v49, %v196_v49 }
  0xb2   :  { %v201_v56 = vpack.c.bf16 %v185_v52, %v185_v52  ;;  %v205_v57 = vpack.c.bf16 %v189_v53, %v189_v53 }
  0xb3   :  { %225 = vst.msk [vmem:[%s446_s2 + $0x28] sm:$0xf] %vm214_vm2, %v208_v54 }
  0xb4   :  { %229 = vst.msk [vmem:[%s446_s2 + $0x38] sm:$0xf] %vm214_vm2, %v212_v55 }
  0xb5   :  { %218 = vst.msk [vmem:[%s446_s2 + $0xc] sm:$0xf] %vm214_vm2, %v201_v56 }
  0xb6   :  { %222 = vst.msk [vmem:[%s446_s2 + $0x1c] sm:$0xf] %vm214_vm2, %v205_v57  ;;  %v169_v58 = vpop.f32.mrf.mxu2  ;;  %v179_v59 = vpop.f32.mrf.mxu3 }
  0xb7   :  { %v193_v60 = vmax.f32 %v169_v58, 0.0  ;;  %v197_v61 = vmax.f32 %v179_v59, 0.0 }
  0xb9   :  { %v209_v62 = vpack.c.bf16 %v193_v60, %v193_v60  ;;  %v213_v63 = vpack.c.bf16 %v197_v61, %v197_v61 }
  0xbb   :  { %226 = vst.msk [vmem:[%s446_s2 + $0x2c] sm:$0xf] %vm214_vm2, %v209_v62 }
  0xbc   :  { %230 = vst.msk [vmem:[%s446_s2 + $0x3c] sm:$0xf] %vm214_vm2, %v213_v63 }

// kernel: fwd.5
= control target key start
LH: loop header
LB: loop body
LE: loop exit
PB: predicated region body
PF: predicated region fallthrough
CT: control target
= control target key end

     0   :  { %vm711_vm0 = vcmask 523264   ;;  %vm728_vm1 = vcmask 48128   ;;  %s1332_s1 = inlined_call_operand.vmem [shape: bf16[1024,64], index: 1, kind: input, shape index: {}]   ;;  %s1333_s2 = inlined_call_operand.vmem [shape: f32[1,64], index: 2, kind: input, shape index: {}]   ;;  %s1334_s0 = inlined_call_operand.vmem [shape: bf16[8,1024], index: 0, kind: input, shape index: {}]   ;;  %s1335_s4 = inlined_call_operand.vmem [shape: f32[1,6], index: 4, kind: input, shape index: {}]   ;;  %s1336_s3 = inlined_call_operand.vmem [shape: bf16[64,6], index: 3, kind: input, shape index: {}]   ;;  %s1337_s5 = inlined_call_operand.vmem [shape: f32[8,6], index: 5, kind: output, shape index: {}]  }
   0x1   :  { %v1014_v0 = vld [vmem:[%s1332_s1 + $0x38] sm:$0xff]  ;;  %v1013_v4 = vld [vmem:[%s1332_s1 + $0x30] sm:$0xff]  ;;  %v1012_v8 = vld [vmem:[%s1332_s1 + $0x28] sm:$0xff] }
   0x2   :  { %v1022_v1 = vld [vmem:[%s1332_s1 + $0x78] sm:$0xff]  ;;  %569 = vmatpush.bf16.msra.mxu0 %v1014_v0  ;;  %v1021_v5 = vld [vmem:[%s1332_s1 + $0x70] sm:$0xff]  ;;  %v1020_v9 = vld [vmem:[%s1332_s1 + $0x68] sm:$0xff] }
   0x3   :  { %v1030_v2 = vld [vmem:[%s1332_s1 + $0xb8] sm:$0xff]  ;;  %582 = vmatpush.bf16.msra.mxu1 %v1022_v1  ;;  %v1029_v6 = vld [vmem:[%s1332_s1 + $0xb0] sm:$0xff]  ;;  %v1028_v10 = vld [vmem:[%s1332_s1 + $0xa8] sm:$0xff] }
   0x4   :  { %v1038_v3 = vld [vmem:[%s1332_s1 + $0xf8] sm:$0xff]  ;;  %595 = vmatpush.bf16.msra.mxu2 %v1030_v2  ;;  %v1037_v7 = vld [vmem:[%s1332_s1 + $0xf0] sm:$0xff]  ;;  %v1036_v11 = vld [vmem:[%s1332_s1 + $0xe8] sm:$0xff] }
   0x5   :  { %608 = vmatpush.bf16.msra.mxu3 %v1038_v3  ;;  %v1011_v12 = vld [vmem:[%s1332_s1 + $0x20] sm:$0xff]  ;;  %v1010_v16 = vld [vmem:[%s1332_s1 + $0x18] sm:$0xff]  ;;  %v1009_v20 = vld [vmem:[%s1332_s1 + $0x10] sm:$0xff] }
   0x6   :  { %570 = vmatpush.bf16.msra.mxu0 %v1013_v4  ;;  %v1019_v13 = vld [vmem:[%s1332_s1 + $0x60] sm:$0xff]  ;;  %v1018_v17 = vld [vmem:[%s1332_s1 + $0x58] sm:$0xff]  ;;  %v1017_v21 = vld [vmem:[%s1332_s1 + $0x50] sm:$0xff] }
   0x7   :  { %583 = vmatpush.bf16.msra.mxu1 %v1021_v5  ;;  %v1027_v14 = vld [vmem:[%s1332_s1 + $0xa0] sm:$0xff]  ;;  %v1026_v18 = vld [vmem:[%s1332_s1 + $0x98] sm:$0xff]  ;;  %v1025_v22 = vld [vmem:[%s1332_s1 + $0x90] sm:$0xff] }
   0x8   :  { %596 = vmatpush.bf16.msra.mxu2 %v1029_v6  ;;  %v1035_v15 = vld [vmem:[%s1332_s1 + $0xe0] sm:$0xff]  ;;  %v1034_v19 = vld [vmem:[%s1332_s1 + $0xd8] sm:$0xff]  ;;  %v1033_v23 = vld [vmem:[%s1332_s1 + $0xd0] sm:$0xff] }
   0x9   :  { %609 = vmatpush.bf16.msra.mxu3 %v1037_v7  ;;  %v1008_v24 = vld [vmem:[%s1332_s1 + $0x8] sm:$0xff]  ;;  %v21_v29 = vld [vmem:[%s1334_s0] sm:$0xff]  ;;  %v1046_v38 = vld [vmem:[%s1332_s1 + $0x138] sm:$0xff] }
   0xa   :  { %571 = vmatpush.bf16.msra.mxu0 %v1012_v8  ;;  %v1016_v25 = vld [vmem:[%s1332_s1 + $0x48] sm:$0xff]  ;;  %v1007_v30 = vld [vmem:[%s1332_s1] sm:$0xff]  ;;  %v161_v33 = vunpack.c.l.b16 %v21_v29  ;;  %v162_v37 = vunpack.c.h.b16 %v21_v29  ;;  %v1054_v39 = vld [vmem:[%s1332_s1 + $0x178] sm:$0xff] }
   0xb   :  { %584 = vmatpush.bf16.msra.mxu1 %v1020_v9  ;;  %v1024_v26 = vld [vmem:[%s1332_s1 + $0x88] sm:$0xff]  ;;  %v1015_v31 = vld [vmem:[%s1332_s1 + $0x40] sm:$0xff]  ;;  %v1062_v40 = vld [vmem:[%s1332_s1 + $0x1b8] sm:$0xff] }
   0xc   :  { %597 = vmatpush.bf16.msra.mxu2 %v1028_v10  ;;  %v1032_v27 = vld [vmem:[%s1332_s1 + $0xc8] sm:$0xff]  ;;  %v1023_v34 = vld [vmem:[%s1332_s1 + $0x80] sm:$0xff]  ;;  %v1070_v41 = vld [vmem:[%s1332_s1 + $0x1f8] sm:$0xff]  ;;  %v169_v43 = vpack.c.b16 %v161_v33, %v161_v33  ;;  %v170_v45 = vpack.c.b16 %v162_v37, %v162_v37 }
   0xd   :  { %610 = vmatpush.bf16.msra.mxu3 %v1036_v11  ;;  %v22_v28 = vld [vmem:[%s1334_s0 + $0x8] sm:$0xff]  ;;  %v1031_v35 = vld [vmem:[%s1332_s1 + $0xc0] sm:$0xff]  ;;  %v1045_v46 = vld [vmem:[%s1332_s1 + $0x130] sm:$0xff] }
   0xe   :  { %572 = vmatpush.bf16.msra.mxu0 %v1011_v12  ;;  %v163_v32 = vunpack.c.l.b16 %v22_v28  ;;  %v164_v36 = vunpack.c.h.b16 %v22_v28  ;;  %v1053_v47 = vld [vmem:[%s1332_s1 + $0x170] sm:$0xff]  ;;  %v1044_v50 = vld [vmem:[%s1332_s1 + $0x128] sm:$0xff]  ;;  %v1043_v54 = vld [vmem:[%s1332_s1 + $0x120] sm:$0xff] }
   0xf   :  { %585 = vmatpush.bf16.msra.mxu1 %v1019_v13  ;;  %v1061_v48 = vld [vmem:[%s1332_s1 + $0x1b0] sm:$0xff]  ;;  %v1052_v51 = vld [vmem:[%s1332_s1 + $0x168] sm:$0xff]  ;;  %v1051_v55 = vld [vmem:[%s1332_s1 + $0x160] sm:$0xff] }
  0x10   :  { %598 = vmatpush.bf16.msra.mxu2 %v1027_v14  ;;  %v171_v42 = vpack.c.b16 %v163_v32, %v163_v32  ;;  %v172_v44 = vpack.c.b16 %v164_v36, %v164_v36  ;;  %v1069_v49 = vld [vmem:[%s1332_s1 + $0x1f0] sm:$0xff]  ;;  %v1060_v52 = vld [vmem:[%s1332_s1 + $0x1a8] sm:$0xff]  ;;  %v1059_v56 = vld [vmem:[%s1332_s1 + $0x1a0] sm:$0xff] }
  0x11   :  { %611 = vmatpush.bf16.msra.mxu3 %v1035_v15  ;;  %v1068_v53 = vld [vmem:[%s1332_s1 + $0x1e8] sm:$0xff]  ;;  %v1067_v57 = vld [vmem:[%s1332_s1 + $0x1e0] sm:$0xff]  ;;  %v1042_v58 = vld [vmem:[%s1332_s1 + $0x118] sm:$0xff] }
  0x12   :  { %573 = vmatpush.bf16.msra.mxu0 %v1010_v16  ;;  %v1050_v59 = vld [vmem:[%s1332_s1 + $0x158] sm:$0xff]  ;;  %v1041_v62 = vld [vmem:[%s1332_s1 + $0x110] sm:$0xff]  ;;  %v1040_v2 = vld [vmem:[%s1332_s1 + $0x108] sm:$0xff] }
  0x13   :  { %586 = vmatpush.bf16.msra.mxu1 %v1018_v17  ;;  %v1058_v60 = vld [vmem:[%s1332_s1 + $0x198] sm:$0xff]  ;;  %v1049_v63 = vld [vmem:[%s1332_s1 + $0x150] sm:$0xff]  ;;  %v1048_v3 = vld [vmem:[%s1332_s1 + $0x148] sm:$0xff] }
  0x14   :  { %599 = vmatpush.bf16.msra.mxu2 %v1026_v18  ;;  %v1066_v61 = vld [vmem:[%s1332_s1 + $0x1d8] sm:$0xff]  ;;  %v1057_v0 = vld [vmem:[%s1332_s1 + $0x190] sm:$0xff]  ;;  %v1056_v5 = vld [vmem:[%s1332_s1 + $0x188] sm:$0xff] }
  0x15   :  { %612 = vmatpush.bf16.msra.mxu3 %v1034_v19  ;;  %v1065_v1 = vld [vmem:[%s1332_s1 + $0x1d0] sm:$0xff]  ;;  %v1064_v6 = vld [vmem:[%s1332_s1 + $0x1c8] sm:$0xff]  ;;  %v24_v7 = vld [vmem:[%s1334_s0 + $0x18] sm:$0xff] }
  0x16   :  { %574 = vmatpush.bf16.msra.mxu0 %v1009_v20  ;;  %v23_v4 = vld [vmem:[%s1334_s0 + $0x10] sm:$0xff]  ;;  %v1039_v10 = vld [vmem:[%s1332_s1 + $0x100] sm:$0xff]  ;;  %v167_v12 = vunpack.c.l.b16 %v24_v7  ;;  %v168_v13 = vunpack.c.h.b16 %v24_v7  ;;  %v1074_v20 = vld [vmem:[%s1336_s3 + $0x18] sm:$0xff] }
  0x17   :  { %587 = vmatpush.bf16.msra.mxu1 %v1017_v21  ;;  %v165_v8 = vunpack.c.l.b16 %v23_v4  ;;  %v166_v9 = vunpack.c.h.b16 %v23_v4  ;;  %v1047_v11 = vld [vmem:[%s1332_s1 + $0x140] sm:$0xff] }
  0x18   :  { %600 = vmatpush.bf16.msra.mxu2 %v1025_v22  ;;  %v1055_v14 = vld [vmem:[%s1332_s1 + $0x180] sm:$0xff]  ;;  %v175_v18 = vpack.c.b16 %v167_v12, %v167_v12  ;;  %v176_v19 = vpack.c.b16 %v168_v13, %v168_v13  ;;  %v1073_v22 = vld [vmem:[%s1336_s3 + $0x10] sm:$0xff] }
  0x19   :  { %613 = vmatpush.bf16.msra.mxu3 %v1033_v23  ;;  %v1063_v15 = vld [vmem:[%s1332_s1 + $0x1c0] sm:$0xff]  ;;  %v173_v16 = vpack.c.b16 %v165_v8, %v165_v8  ;;  %v174_v17 = vpack.c.b16 %v166_v9, %v166_v9 }
  0x1a   :  { %575 = vmatpush.bf16.msra.mxu0 %v1008_v24  ;;  %v1072_v24 = vld [vmem:[%s1336_s3 + $0x8] sm:$0xff]  ;;  %v1071_v28 = vld [vmem:[%s1336_s3] sm:$0xff] }
  0x1b   :  { %588 = vmatpush.bf16.msra.mxu1 %v1016_v25 }
  0x1c   :  { %601 = vmatpush.bf16.msra.mxu2 %v1024_v26 }
  0x1d   :  { %614 = vmatpush.bf16.msra.mxu3 %v1032_v27 }
  0x1e   :  { %576 = vmatpush.bf16.msra.mxu0 %v1007_v30  ;;  %v1075_v30 = vld [vmem:[%s1333_s2] ss:$0 sm:$0xff] }
  0x1f   :  { %589 = vmatpush.bf16.msra.mxu1 %v1015_v31 }
  0x20   :  { %602 = vmatpush.bf16.msra.mxu2 %v1023_v34 }
  0x21   :  { %615 = vmatpush.bf16.msra.mxu3 %v1031_v35  ;;  %577 = vmatmul.bf16.vlgmr.msra.gmra.mxu0 %v169_v43 }
  0x22   :  { %621 = vmatpush.bf16.msrb.mxu0 %v1046_v38  ;;  %590 = vmatmul.bf16.vlgmr.msra.gmra.mxu1 %v170_v45 }
  0x23   :  { %634 = vmatpush.bf16.msrb.mxu1 %v1054_v39  ;;  %603 = vmatmul.bf16.vlgmr.msra.gmra.mxu2 %v171_v42 }
  0x24   :  { %647 = vmatpush.bf16.msrb.mxu2 %v1062_v40  ;;  %616 = vmatmul.bf16.vlgmr.msra.gmra.mxu3 %v172_v44 }
  0x25   :  { %660 = vmatpush.bf16.msrb.mxu3 %v1070_v41 }
  0x26   :  { %622 = vmatpush.bf16.msrb.mxu0 %v1045_v46 }
  0x27   :  { %635 = vmatpush.bf16.msrb.mxu1 %v1053_v47 }
  0x28   :  { %648 = vmatpush.bf16.msrb.mxu2 %v1061_v48 }
  0x29   :  { %661 = vmatpush.bf16.msrb.mxu3 %v1069_v49 }
  0x2a   :  { %623 = vmatpush.bf16.msrb.mxu0 %v1044_v50 }
  0x2b   :  { %636 = vmatpush.bf16.msrb.mxu1 %v1052_v51  ;;  %v1076_v51 = vld [vmem:[%s1335_s4] ss:$0 sm:$0xff] }
  0x2c   :  { %649 = vmatpush.bf16.msrb.mxu2 %v1060_v52 }
  0x2d   :  { %662 = vmatpush.bf16.msrb.mxu3 %v1068_v53 }
  0x2e   :  { %624 = vmatpush.bf16.msrb.mxu0 %v1043_v54 }
  0x2f   :  { %637 = vmatpush.bf16.msrb.mxu1 %v1051_v55 }
  0x30   :  { %650 = vmatpush.bf16.msrb.mxu2 %v1059_v56 }
  0x31   :  { %663 = vmatpush.bf16.msrb.mxu3 %v1067_v57 }
  0x32   :  { %625 = vmatpush.bf16.msrb.mxu0 %v1042_v58 }
  0x33   :  { %638 = vmatpush.bf16.msrb.mxu1 %v1050_v59 }
  0x34   :  { %651 = vmatpush.bf16.msrb.mxu2 %v1058_v60 }
  0x35   :  { %664 = vmatpush.bf16.msrb.mxu3 %v1066_v61 }
  0x36   :  { %626 = vmatpush.bf16.msrb.mxu0 %v1041_v62 }
  0x37   :  { %639 = vmatpush.bf16.msrb.mxu1 %v1049_v63 }
  0x38   :  { %652 = vmatpush.bf16.msrb.mxu2 %v1057_v0 }
  0x39   :  { %665 = vmatpush.bf16.msrb.mxu3 %v1065_v1 }
  0x3a   :  { %627 = vmatpush.bf16.msrb.mxu0 %v1040_v2 }
  0x3b   :  { %640 = vmatpush.bf16.msrb.mxu1 %v1048_v3 }
  0x3c   :  { %653 = vmatpush.bf16.msrb.mxu2 %v1056_v5 }
  0x3d   :  { %666 = vmatpush.bf16.msrb.mxu3 %v1064_v6 }
  0x3e   :  { %628 = vmatpush.bf16.msrb.mxu0 %v1039_v10 }
  0x3f   :  { %641 = vmatpush.bf16.msrb.mxu1 %v1047_v11 }
  0x40   :  { %654 = vmatpush.bf16.msrb.mxu2 %v1055_v14 }
  0x41   :  { %667 = vmatpush.bf16.msrb.mxu3 %v1063_v15  ;;  %629 = vmatmul.bf16.vlgmr.msrb.gmra.mxu0 %v173_v16 }
  0x42   :  { %642 = vmatmul.bf16.vlgmr.msrb.gmra.mxu1 %v174_v17  ;;  %719 = vmatpush.bf16.msra.mxu0 %v1074_v20 }
  0x43   :  { %655 = vmatmul.bf16.vlgmr.msrb.gmra.mxu2 %v175_v18 }
  0x44   :  { %668 = vmatmul.bf16.vlgmr.msrb.gmra.mxu3 %v176_v19 }
  0x46   :  { %720 = vmatpush.bf16.msra.mxu0 %v1073_v22 }
  0x4a   :  { %721 = vmatpush.bf16.msra.mxu0 %v1072_v24 }
  0x4e   :  { %722 = vmatpush.bf16.msra.mxu0 %v1071_v28 }
  0x9e   :  { %v578_v21 = vpop.f32.mrf.mxu0 }
  0x9f   :  { %v591_v23 = vpop.f32.mrf.mxu1  ;;  %v579_v33 = vadd.f32 %v1075_v30, %v578_v21 }
  0xa1   :  { %v592_v34 = vadd.f32 %v591_v23, %v579_v33 }
  0xa6   :  { %v604_v25 = vpop.f32.mrf.mxu2  ;;  %v580_v27 = vpop.f32.mrf.mxu0 }
  0xa7   :  { %v617_v26 = vpop.f32.mrf.mxu3  ;;  %v593_v29 = vpop.f32.mrf.mxu1  ;;  %v605_v35 = vadd.f32 %v604_v25, %v592_v34 }
  0xa9   :  { %v618_v36 = vadd.f32 %v617_v26, %v605_v35 }
  0xae   :  { %v606_v31 = vpop.f32.mrf.mxu2 }
  0xaf   :  { %v619_v32 = vpop.f32.mrf.mxu3 }
  0xbe   :  { %v630_v37 = vpop.f32.mrf.mxu0 }
  0xbf   :  { %v643_v38 = vpop.f32.mrf.mxu1  ;;  %v631_v39 = vadd.f32 %v630_v37, %v618_v36 }
  0xc1   :  { %v644_v40 = vadd.f32 %v643_v38, %v631_v39 }
  0xc6   :  { %v656_v41 = vpop.f32.mrf.mxu2  ;;  %v632_v44 = vpop.f32.mrf.mxu0 }
  0xc7   :  { %v669_v42 = vpop.f32.mrf.mxu3  ;;  %v657_v43 = vadd.f32 %v656_v41, %v644_v40  ;;  %v645_v45 = vpop.f32.mrf.mxu1 }
  0xc9   :  { %v670_v46 = vadd.f32 %v669_v42, %v657_v43 }
  0xcb   :  { %v673_v47 = vmax.f32 %v670_v46, 0.0 }
  0xcd   :  { %v674_v48 = vpack.c.bf16 %v673_v47, %v673_v47 }
  0xce   :  { %v658_v49 = vpop.f32.mrf.mxu2 }
  0xcf   :  { %v671_v50 = vpop.f32.mrf.mxu3  ;;  %1006 = vmatmul.msk.bf16.vlgmr.msra.gmra.mxu0 %vm711_vm0, %v674_v48 }
 0x14c   :  { %v724_v52 = vpop.f32.mrf.mxu0 }
 0x14d   :  { %v725_v53 = vadd.f32 %v1076_v51, %v724_v52 }
 0x14f   :  { %729 = vst.msk [vmem:[%s1337_s5] sm:$0xff] %vm728_vm1, %v725_v53 }
 0x154   :  { %v726_v54 = vpop.f32.mrf.mxu0 }

</bundles_post_ra>
